<compile_context>
chip_gen: v7x
topology: tpu7x:2x2x1
jax: 0.10.0
libtpu: 0.0.40
codegen_flags: <defaults>
</compile_context>

<pallas_src>
import math

import numpy as np
import jax
import jax.numpy as jnp
from jax.experimental import pallas as pl
from jax.experimental.pallas import tpu as pltpu

# ---------------- problem sizes (small, synthetic) ----------------
B = 2            # batch
N = 8            # nodes
E = 16           # edges
F0 = 8           # fc_neurons[0]  (edge_type feature dim)
H1 = 16          # fc_neurons[1]
W_NUMEL = 3      # tp.weight_numel (one scalar weight per path)
OUT_DIM = 9      # 0e(1) + 1e(3) + 2e(5)
NUM_NEIGHBORS = 4.0

_SQRT2 = math.sqrt(2.0)
_SQRT3 = math.sqrt(3.0)
_SQRT6 = math.sqrt(6.0)


def _build_constants():
    """Trace-time constants: CG matrix, path selector, outer-product expanders."""
    # Outer-product flat index k = 3*i + j   (i: src component, j: dst component)
    # order: [sx*dx, sx*dy, sx*dz, sy*dx, sy*dy, sy*dz, sz*dx, sz*dy, sz*dz]
    cg = np.zeros((9, 9), np.float32)
    # 0e: normalized dot product
    for k in (0, 4, 8):
        cg[k, 0] = 1.0 / _SQRT3
    # 1e: normalized cross product
    cg[5, 1], cg[7, 1] = 1.0 / _SQRT2, -1.0 / _SQRT2      # sy*dz - sz*dy
    cg[6, 2], cg[2, 2] = 1.0 / _SQRT2, -1.0 / _SQRT2      # sz*dx - sx*dz
    cg[1, 3], cg[3, 3] = 1.0 / _SQRT2, -1.0 / _SQRT2      # sx*dy - sy*dx
    # 2e: symmetric traceless part (orthonormal basis)
    cg[1, 4] = cg[3, 4] = 1.0 / _SQRT2                    # (sx*dy + sy*dx)/sqrt2
    cg[5, 5] = cg[7, 5] = 1.0 / _SQRT2                    # (sy*dz + sz*dy)/sqrt2
    cg[8, 6] = 2.0 / _SQRT6
    cg[0, 6] = cg[4, 6] = -1.0 / _SQRT6                   # (2 sz*dz - sx*dx - sy*dy)/sqrt6
    cg[6, 7] = cg[2, 7] = 1.0 / _SQRT2                    # (sz*dx + sx*dz)/sqrt2
    cg[0, 8], cg[4, 8] = 1.0 / _SQRT2, -1.0 / _SQRT2      # (sx*dx - sy*dy)/sqrt2
    # Fold the post-scatter neighbor normalization into the constant matrix.
    cg *= 1.0 / math.sqrt(NUM_NEIGHBORS)

    # Path selector (folded into w2): per-path weight -> per-output-component.
    sel = np.zeros((W_NUMEL, OUT_DIM), np.float32)
    sel[0, 0] = 1.0
    sel[1, 1:4] = 1.0
    sel[2, 4:9] = 1.0

    # Outer-product expansion matrices: outer[:, 3*i + j] = src[:, i] * dst[:, j]
    r_src = np.zeros((3, 9), np.float32)
    r_dst = np.zeros((3, 9), np.float32)
    for i in range(3):
        for j in range(3):
            r_src[i, 3 * i + j] = 1.0
            r_dst[j, 3 * i + j] = 1.0
    return cg, sel, r_src, r_dst


_CG_NP, _SEL_NP, _RSRC_NP, _RDST_NP = _build_constants()


def prepare_params(w1, w2):
    """One-time parameter prep: fold fan-in scales and the path selector."""
    w1s = jnp.asarray(w1, jnp.float32) * (1.0 / math.sqrt(F0))
    w2s9 = (jnp.asarray(w2, jnp.float32) * (1.0 / math.sqrt(H1))) @ jnp.asarray(_SEL_NP)
    return w1s, w2s9                                            # (F0,H1), (H1,9)


def _conv_kernel(edge_type_ref, w1_ref, w2_ref, cg_ref, rsrc_ref, rdst_ref,
                 g_both_ref, s_dst_ref, node_ref, out_ref):
    f32 = jnp.float32

    # ---- batch-independent MLP on edge_type (computed ONCE for all batches) ----
    # scales 1/sqrt(F0), 1/sqrt(H1) and the path selector are pre-folded into w1/w2.
    h = jnp.dot(edge_type_ref[...], w1_ref[...], preferred_element_type=f32)
    h = h * jax.nn.sigmoid(h)                                   # SiLU
    w9 = jnp.dot(h, w2_ref[...], preferred_element_type=f32)    # (E, 9)

    cg = cg_ref[...]                                            # (9, 9) incl. 1/sqrt(num_neighbors)
    r_src = rsrc_ref[...]                                       # (3, 9)
    r_dst = rdst_ref[...]                                       # (3, 9)
    g_both = g_both_ref[...]                                    # (2E, N)
    s_dst = s_dst_ref[...]                                      # (N, E)

    for b in range(B):                                          # B = 2: static unroll
        node_b = node_ref[b]                                    # (N, 3)

        # ---- merged src/dst gather: one (2E, N) @ (N, 3) matmul ----
        gathered = jnp.dot(g_both, node_b, preferred_element_type=f32)   # (2E, 3)
        src = gathered[:E]                                      # sublane slice, cheap
        dst = gathered[E:]

        # ---- tensor product as MXU matmuls (no lane slices / concats) ----
        # outer[:, 3*i+j] = src[:, i] * dst[:, j]
        outer = (jnp.dot(src, r_src, preferred_element_type=f32) *
                 jnp.dot(dst, r_dst, preferred_element_type=f32))        # (E, 9)
        paths = jnp.dot(outer, cg, preferred_element_type=f32)           # (E, 9)
        msg = paths * w9                                        # per-edge learned path weights

        # ---- scatter-sum over destination nodes (neighbor norm already in cg) ----
        out_ref[b] = jnp.dot(s_dst, msg,
                             preferred_element_type=f32).astype(out_ref.dtype)


def convolution_v1(edge_src, edge_dst, node_emb, edge_type, w1s, w2s9):
    """edge_src/edge_dst: (E,) int32; node_emb: (B, N, 3); edge_type: (E, F0)."""
    g_src = jax.nn.one_hot(edge_src, N, dtype=jnp.float32)      # (E, N) gather
    g_dst = jax.nn.one_hot(edge_dst, N, dtype=jnp.float32)      # (E, N) gather
    g_both = jnp.concatenate([g_src, g_dst], axis=0)            # (2E, N) merged gather
    s_dst = g_dst.T                                             # (N, E) scatter

    cg = jnp.asarray(_CG_NP)
    r_src = jnp.asarray(_RSRC_NP)
    r_dst = jnp.asarray(_RDST_NP)

    # Single grid step: the whole problem (< 10 KiB) lives in VMEM; batch is
    # unrolled inside the kernel, so there is no per-batch pipeline overhead
    # and the edge MLP runs exactly once.
    return pl.pallas_call(
        _conv_kernel,
        out_shape=jax.ShapeDtypeStruct((B, N, OUT_DIM), jnp.float32),
        grid_spec=pltpu.PrefetchScalarGridSpec(
            num_scalar_prefetch=0,
            grid=(1,),
            in_specs=[
                pl.BlockSpec((E, F0), lambda i: (0, 0)),
                pl.BlockSpec((F0, H1), lambda i: (0, 0)),
                pl.BlockSpec((H1, OUT_DIM), lambda i: (0, 0)),
                pl.BlockSpec((9, 9), lambda i: (0, 0)),
                pl.BlockSpec((3, 9), lambda i: (0, 0)),
                pl.BlockSpec((3, 9), lambda i: (0, 0)),
                pl.BlockSpec((2 * E, N), lambda i: (0, 0)),
                pl.BlockSpec((N, E), lambda i: (0, 0)),
                pl.BlockSpec((B, N, 3), lambda i: (0, 0, 0)),
            ],
            out_specs=pl.BlockSpec((B, N, OUT_DIM), lambda i: (0, 0, 0)),
        ),
        compiler_params=pltpu.CompilerParams(
            dimension_semantics=("arbitrary",)),
    )(edge_type, w1s, w2s9, cg, r_src, r_dst, g_both, s_dst, node_emb)


def _reference(edge_src, edge_dst, node_emb, edge_type, w1, w2):
    """Pure-JAX reference with identical semantics (unfolded parameters)."""
    h = edge_type @ w1 / math.sqrt(F0)
    h = h * jax.nn.sigmoid(h)
    w = h @ w2 / math.sqrt(H1)                                   # (E, 3)
    src = node_emb[:, edge_src]                                  # (B, E, 3)
    dst = node_emb[:, edge_dst]                                  # (B, E, 3)
    sx, sy, sz = src[..., 0], src[..., 1], src[..., 2]
    dx, dy, dz = dst[..., 0], dst[..., 1], dst[..., 2]
    p0 = ((sx * dx + sy * dy + sz * dz) / _SQRT3)[..., None]
    p1 = jnp.stack([sy * dz - sz * dy, sz * dx - sx * dz, sx * dy - sy * dx],
                   -1) / _SQRT2
    p2 = jnp.stack([(sx * dy + sy * dx) / _SQRT2,
                    (sy * dz + sz * dy) / _SQRT2,
                    (2 * sz * dz - sx * dx - sy * dy) / _SQRT6,
                    (sz * dx + sx * dz) / _SQRT2,
                    (sx * dx - sy * dy) / _SQRT2], -1)
    msg = jnp.concatenate([w[None, :, 0:1] * p0,
                           w[None, :, 1:2] * p1,
                           w[None, :, 2:3] * p2], -1)            # (B, E, 9)
    out = jnp.zeros((B, N, OUT_DIM), jnp.float32)
    out = out.at[:, edge_dst].add(msg)
    return out / math.sqrt(NUM_NEIGHBORS)


if __name__ == "__main__":
    key = jax.random.PRNGKey(0)
    k_src, k_dst, k_node, k_edge, k_w1, k_w2 = jax.random.split(key, 6)

    edge_src = jax.random.randint(k_src, (E,), 0, N, dtype=jnp.int32)
    edge_dst = jax.random.randint(k_dst, (E,), 0, N, dtype=jnp.int32)
    node_emb = jax.random.normal(k_node, (B, N, 3), jnp.float32)
    edge_type = jax.random.normal(k_edge, (E, F0), jnp.float32)
    # deterministic MLP parameters (shapes from FullyConnectedNet([F0, H1, 3]))
    w1 = jax.random.normal(k_w1, (F0, H1), jnp.float32)
    w2 = jax.random.normal(k_w2, (H1, W_NUMEL), jnp.float32)

    # One-time parameter prep (outside the per-call hot path).
    w1s, w2s9 = prepare_params(w1, w2)

    out = convolution_v1(edge_src, edge_dst, node_emb, edge_type, w1s, w2s9)
    out = jax.block_until_ready(out)

    ref = _reference(edge_src, edge_dst, node_emb, edge_type, w1, w2)
    assert out.shape == (B, N, OUT_DIM)
    assert jnp.allclose(out, ref, atol=1e-4, rtol=1e-4), \
        f"max err {jnp.max(jnp.abs(out - ref))}"
    print("KERNEL_OK")
</pallas_src>

<mosaic_0001>
module attributes {stable_mosaic.version = 11 : i64} {
  func.func @_conv_kernel(%arg0: i32, %arg1: memref<16x8xf32, #tpu.memory_space<vmem>>, %arg2: memref<8x16xf32, #tpu.memory_space<vmem>>, %arg3: memref<16x9xf32, #tpu.memory_space<vmem>>, %arg4: memref<9x9xf32, #tpu.memory_space<vmem>>, %arg5: memref<3x9xf32, #tpu.memory_space<vmem>>, %arg6: memref<3x9xf32, #tpu.memory_space<vmem>>, %arg7: memref<32x8xf32, #tpu.memory_space<vmem>>, %arg8: memref<8x16xf32, #tpu.memory_space<vmem>>, %arg9: memref<2x8x3xf32, #tpu.memory_space<vmem>>, %arg10: memref<2x8x9xf32, #tpu.memory_space<vmem>>) attributes {dimension_semantics = [#tpu.dimension_semantics<arbitrary>], iteration_bounds = array<i64: 1>, scalar_prefetch = 0 : i64, scratch_operands = 0 : i64, tpu.core_type = #tpu.core_type<tc>, window_params = [{pipeline_mode = #tpu.pipeline_mode<synchronous>, transform_indices = @transform_0, window_bounds = array<i64: 16, 8>}, {pipeline_mode = #tpu.pipeline_mode<synchronous>, transform_indices = @transform_1, window_bounds = array<i64: 8, 16>}, {pipeline_mode = #tpu.pipeline_mode<synchronous>, transform_indices = @transform_2, window_bounds = array<i64: 16, 9>}, {pipeline_mode = #tpu.pipeline_mode<synchronous>, transform_indices = @transform_3, window_bounds = array<i64: 9, 9>}, {pipeline_mode = #tpu.pipeline_mode<synchronous>, transform_indices = @transform_4, window_bounds = array<i64: 3, 9>}, {pipeline_mode = #tpu.pipeline_mode<synchronous>, transform_indices = @transform_5, window_bounds = array<i64: 3, 9>}, {pipeline_mode = #tpu.pipeline_mode<synchronous>, transform_indices = @transform_6, window_bounds = array<i64: 32, 8>}, {pipeline_mode = #tpu.pipeline_mode<synchronous>, transform_indices = @transform_7, window_bounds = array<i64: 8, 16>}, {pipeline_mode = #tpu.pipeline_mode<synchronous>, transform_indices = @transform_8, window_bounds = array<i64: 2, 8, 3>}, {pipeline_mode = #tpu.pipeline_mode<synchronous>, transform_indices = @transform_9, window_bounds = array<i64: 2, 8, 9>}]} {
    %c0 = arith.constant 0 : index
    %c0_0 = arith.constant 0 : index
    %0 = vector.load %arg1[%c0, %c0_0] : memref<16x8xf32, #tpu.memory_space<vmem>>, vector<16x8xf32>
    %c0_1 = arith.constant 0 : index
    %c0_2 = arith.constant 0 : index
    %1 = vector.load %arg2[%c0_1, %c0_2] : memref<8x16xf32, #tpu.memory_space<vmem>>, vector<8x16xf32>
    %cst = arith.constant dense<0.000000e+00> : vector<16x16xf32>
    %2 = tpu.matmul %0, %1, %cst {dimension_numbers = #tpu.dot_dimension_numbers<[1], [0], [0], [1], [0, 0, 1, 1], [], []>} : vector<16x8xf32>, vector<8x16xf32>, vector<16x16xf32> -> vector<16x16xf32>
    %3 = arith.negf %2 : vector<16x16xf32>
    %4 = math.exp %3 : vector<16x16xf32>
    %cst_3 = arith.constant 1.000000e+00 : f32
    %5 = vector.broadcast %cst_3 : f32 to vector<16x16xf32>
    %6 = arith.addf %5, %4 : vector<16x16xf32>
    %7 = arith.divf %5, %6 : vector<16x16xf32>
    %8 = arith.mulf %2, %7 : vector<16x16xf32>
    %c0_4 = arith.constant 0 : index
    %c0_5 = arith.constant 0 : index
    %9 = vector.load %arg3[%c0_4, %c0_5] : memref<16x9xf32, #tpu.memory_space<vmem>>, vector<16x9xf32>
    %cst_6 = arith.constant dense<0.000000e+00> : vector<16x9xf32>
    %10 = tpu.matmul %8, %9, %cst_6 {dimension_numbers = #tpu.dot_dimension_numbers<[1], [0], [0], [1], [0, 0, 1, 1], [], []>} : vector<16x16xf32>, vector<16x9xf32>, vector<16x9xf32> -> vector<16x9xf32>
    %c0_7 = arith.constant 0 : index
    %c0_8 = arith.constant 0 : index
    %11 = vector.load %arg4[%c0_7, %c0_8] : memref<9x9xf32, #tpu.memory_space<vmem>>, vector<9x9xf32>
    %c0_9 = arith.constant 0 : index
    %c0_10 = arith.constant 0 : index
    %12 = vector.load %arg5[%c0_9, %c0_10] : memref<3x9xf32, #tpu.memory_space<vmem>>, vector<3x9xf32>
    %c0_11 = arith.constant 0 : index
    %c0_12 = arith.constant 0 : index
    %13 = vector.load %arg6[%c0_11, %c0_12] : memref<3x9xf32, #tpu.memory_space<vmem>>, vector<3x9xf32>
    %c0_13 = arith.constant 0 : index
    %c0_14 = arith.constant 0 : index
    %14 = vector.load %arg7[%c0_13, %c0_14] : memref<32x8xf32, #tpu.memory_space<vmem>>, vector<32x8xf32>
    %c0_15 = arith.constant 0 : index
    %c0_16 = arith.constant 0 : index
    %15 = vector.load %arg8[%c0_15, %c0_16] : memref<8x16xf32, #tpu.memory_space<vmem>>, vector<8x16xf32>
    %c0_17 = arith.constant 0 : index
    %c0_18 = arith.constant 0 : index
    %c0_19 = arith.constant 0 : index
    %16 = vector.load %arg9[%c0_17, %c0_18, %c0_19] : memref<2x8x3xf32, #tpu.memory_space<vmem>>, vector<1x8x3xf32>
    %17 = vector.shape_cast %16 : vector<1x8x3xf32> to vector<8x3xf32>
    %cst_20 = arith.constant dense<0.000000e+00> : vector<32x3xf32>
    %18 = tpu.matmul %14, %17, %cst_20 {dimension_numbers = #tpu.dot_dimension_numbers<[1], [0], [0], [1], [0, 0, 1, 1], [], []>} : vector<32x8xf32>, vector<8x3xf32>, vector<32x3xf32> -> vector<32x3xf32>
    %19 = vector.extract_strided_slice %18 {offsets = [0, 0], sizes = [16, 3], strides = [1, 1]} : vector<32x3xf32> to vector<16x3xf32>
    %20 = vector.extract_strided_slice %18 {offsets = [16, 0], sizes = [16, 3], strides = [1, 1]} : vector<32x3xf32> to vector<16x3xf32>
    %cst_21 = arith.constant dense<0.000000e+00> : vector<16x9xf32>
    %21 = tpu.matmul %19, %12, %cst_21 {dimension_numbers = #tpu.dot_dimension_numbers<[1], [0], [0], [1], [0, 0, 1, 1], [], []>} : vector<16x3xf32>, vector<3x9xf32>, vector<16x9xf32> -> vector<16x9xf32>
    %cst_22 = arith.constant dense<0.000000e+00> : vector<16x9xf32>
    %22 = tpu.matmul %20, %13, %cst_22 {dimension_numbers = #tpu.dot_dimension_numbers<[1], [0], [0], [1], [0, 0, 1, 1], [], []>} : vector<16x3xf32>, vector<3x9xf32>, vector<16x9xf32> -> vector<16x9xf32>
    %23 = arith.mulf %21, %22 : vector<16x9xf32>
    %cst_23 = arith.constant dense<0.000000e+00> : vector<16x9xf32>
    %24 = tpu.matmul %23, %11, %cst_23 {dimension_numbers = #tpu.dot_dimension_numbers<[1], [0], [0], [1], [0, 0, 1, 1], [], []>} : vector<16x9xf32>, vector<9x9xf32>, vector<16x9xf32> -> vector<16x9xf32>
    %25 = arith.mulf %24, %10 : vector<16x9xf32>
    %cst_24 = arith.constant dense<0.000000e+00> : vector<8x9xf32>
    %26 = tpu.matmul %15, %25, %cst_24 {dimension_numbers = #tpu.dot_dimension_numbers<[1], [0], [0], [1], [0, 0, 1, 1], [], []>} : vector<8x16xf32>, vector<16x9xf32>, vector<8x9xf32> -> vector<8x9xf32>
    %c0_25 = arith.constant 0 : index
    %c0_26 = arith.constant 0 : index
    %c0_27 = arith.constant 0 : index
    %27 = vector.load %arg10[%c0_25, %c0_26, %c0_27] : memref<2x8x9xf32, #tpu.memory_space<vmem>>, vector<1x8x9xf32>
    %28 = vector.shape_cast %27 : vector<1x8x9xf32> to vector<8x9xf32>
    %29 = vector.shape_cast %26 : vector<8x9xf32> to vector<1x8x9xf32>
    tpu.vector_store %arg10[%c0_25, %c0_26, %c0_27], %29 {strides = array<i32>} : memref<2x8x9xf32, #tpu.memory_space<vmem>>, vector<1x8x9xf32>,
    %c1 = arith.constant 1 : index
    %c0_28 = arith.constant 0 : index
    %c0_29 = arith.constant 0 : index
    %30 = vector.load %arg9[%c1, %c0_28, %c0_29] : memref<2x8x3xf32, #tpu.memory_space<vmem>>, vector<1x8x3xf32>
    %31 = vector.shape_cast %30 : vector<1x8x3xf32> to vector<8x3xf32>
    %cst_30 = arith.constant dense<0.000000e+00> : vector<32x3xf32>
    %32 = tpu.matmul %14, %31, %cst_30 {dimension_numbers = #tpu.dot_dimension_numbers<[1], [0], [0], [1], [0, 0, 1, 1], [], []>} : vector<32x8xf32>, vector<8x3xf32>, vector<32x3xf32> -> vector<32x3xf32>
    %33 = vector.extract_strided_slice %32 {offsets = [0, 0], sizes = [16, 3], strides = [1, 1]} : vector<32x3xf32> to vector<16x3xf32>
    %34 = vector.extract_strided_slice %32 {offsets = [16, 0], sizes = [16, 3], strides = [1, 1]} : vector<32x3xf32> to vector<16x3xf32>
    %cst_31 = arith.constant dense<0.000000e+00> : vector<16x9xf32>
    %35 = tpu.matmul %33, %12, %cst_31 {dimension_numbers = #tpu.dot_dimension_numbers<[1], [0], [0], [1], [0, 0, 1, 1], [], []>} : vector<16x3xf32>, vector<3x9xf32>, vector<16x9xf32> -> vector<16x9xf32>
    %cst_32 = arith.constant dense<0.000000e+00> : vector<16x9xf32>
    %36 = tpu.matmul %34, %13, %cst_32 {dimension_numbers = #tpu.dot_dimension_numbers<[1], [0], [0], [1], [0, 0, 1, 1], [], []>} : vector<16x3xf32>, vector<3x9xf32>, vector<16x9xf32> -> vector<16x9xf32>
    %37 = arith.mulf %35, %36 : vector<16x9xf32>
    %cst_33 = arith.constant dense<0.000000e+00> : vector<16x9xf32>
    %38 = tpu.matmul %37, %11, %cst_33 {dimension_numbers = #tpu.dot_dimension_numbers<[1], [0], [0], [1], [0, 0, 1, 1], [], []>} : vector<16x9xf32>, vector<9x9xf32>, vector<16x9xf32> -> vector<16x9xf32>
    %39 = arith.mulf %38, %10 : vector<16x9xf32>
    %cst_34 = arith.constant dense<0.000000e+00> : vector<8x9xf32>
    %40 = tpu.matmul %15, %39, %cst_34 {dimension_numbers = #tpu.dot_dimension_numbers<[1], [0], [0], [1], [0, 0, 1, 1], [], []>} : vector<8x16xf32>, vector<16x9xf32>, vector<8x9xf32> -> vector<8x9xf32>
    %c1_35 = arith.constant 1 : index
    %c0_36 = arith.constant 0 : index
    %c0_37 = arith.constant 0 : index
    %41 = vector.load %arg10[%c1_35, %c0_36, %c0_37] : memref<2x8x9xf32, #tpu.memory_space<vmem>>, vector<1x8x9xf32>
    %42 = vector.shape_cast %41 : vector<1x8x9xf32> to vector<8x9xf32>
    %43 = vector.shape_cast %40 : vector<8x9xf32> to vector<1x8x9xf32>
    tpu.vector_store %arg10[%c1_35, %c0_36, %c0_37], %43 {strides = array<i32>} : memref<2x8x9xf32, #tpu.memory_space<vmem>>, vector<1x8x9xf32>,
    return
  }
  func.func @transform_0(%arg0: i32) -> (i32, i32) {
    %c0_i32 = arith.constant 0 : i32
    %c0_i32_0 = arith.constant 0 : i32
    %c0_i32_1 = arith.constant 0 : i32
    return %c0_i32, %c0_i32_0 : i32, i32
  }
  func.func @transform_1(%arg0: i32) -> (i32, i32) {
    %c0_i32 = arith.constant 0 : i32
    %c0_i32_0 = arith.constant 0 : i32
    %c0_i32_1 = arith.constant 0 : i32
    return %c0_i32, %c0_i32_0 : i32, i32
  }
  func.func @transform_2(%arg0: i32) -> (i32, i32) {
    %c0_i32 = arith.constant 0 : i32
    %c0_i32_0 = arith.constant 0 : i32
    %c0_i32_1 = arith.constant 0 : i32
    return %c0_i32, %c0_i32_0 : i32, i32
  }
  func.func @transform_3(%arg0: i32) -> (i32, i32) {
    %c0_i32 = arith.constant 0 : i32
    %c0_i32_0 = arith.constant 0 : i32
    %c0_i32_1 = arith.constant 0 : i32
    return %c0_i32, %c0_i32_0 : i32, i32
  }
  func.func @transform_4(%arg0: i32) -> (i32, i32) {
    %c0_i32 = arith.constant 0 : i32
    %c0_i32_0 = arith.constant 0 : i32
    %c0_i32_1 = arith.constant 0 : i32
    return %c0_i32, %c0_i32_0 : i32, i32
  }
  func.func @transform_5(%arg0: i32) -> (i32, i32) {
    %c0_i32 = arith.constant 0 : i32
    %c0_i32_0 = arith.constant 0 : i32
    %c0_i32_1 = arith.constant 0 : i32
    return %c0_i32, %c0_i32_0 : i32, i32
  }
  func.func @transform_6(%arg0: i32) -> (i32, i32) {
    %c0_i32 = arith.constant 0 : i32
    %c0_i32_0 = arith.constant 0 : i32
    %c0_i32_1 = arith.constant 0 : i32
    return %c0_i32, %c0_i32_0 : i32, i32
  }
  func.func @transform_7(%arg0: i32) -> (i32, i32) {
    %c0_i32 = arith.constant 0 : i32
    %c0_i32_0 = arith.constant 0 : i32
    %c0_i32_1 = arith.constant 0 : i32
    return %c0_i32, %c0_i32_0 : i32, i32
  }
  func.func @transform_8(%arg0: i32) -> (i32, i32, i32) {
    %c0_i32 = arith.constant 0 : i32
    %c0_i32_0 = arith.constant 0 : i32
    %c0_i32_1 = arith.constant 0 : i32
    %c0_i32_2 = arith.constant 0 : i32
    return %c0_i32, %c0_i32_0, %c0_i32_1 : i32, i32, i32
  }
  func.func @transform_9(%arg0: i32) -> (i32, i32, i32) {
    %c0_i32 = arith.constant 0 : i32
    %c0_i32_0 = arith.constant 0 : i32
    %c0_i32_1 = arith.constant 0 : i32
    %c0_i32_2 = arith.constant 0 : i32
    return %c0_i32, %c0_i32_0, %c0_i32_1 : i32, i32, i32
  }
}

</mosaic_0001>

<bundles_post_ra>
// kernel: tpu_custom_call.1
= control target key start
LH: loop header
LB: loop body
LE: loop exit
PB: predicated region body
PF: predicated region fallthrough
CT: control target
= control target key end

     0   :  { %vm36_vm0 = vcmask 64512   ;;  %s1483_s0 = inlined_call_operand.vmem [shape: f32[16,8], index: 0, kind: input, shape index: {}]   ;;  %s1484_s1 = inlined_call_operand.vmem [shape: f32[8,16], index: 1, kind: input, shape index: {}]   ;;  %s1485_s2 = inlined_call_operand.vmem [shape: f32[16,9], index: 2, kind: input, shape index: {}]   ;;  %s1486_s3 = inlined_call_operand.vmem [shape: f32[9,9], index: 3, kind: input, shape index: {}]   ;;  %s1487_s4 = inlined_call_operand.vmem [shape: f32[3,9], index: 4, kind: input, shape index: {}]   ;;  %s1488_s5 = inlined_call_operand.vmem [shape: f32[3,9], index: 5, kind: input, shape index: {}]   ;;  %s1489_s6 = inlined_call_operand.vmem [shape: f32[32,8], index: 6, kind: input, shape index: {}]   ;;  %s1490_s7 = inlined_call_operand.vmem [shape: f32[8,16], index: 7, kind: input, shape index: {}]   ;;  %s1491_s8 = inlined_call_operand.vmem [shape: f32[2,8,3], index: 8, kind: input, shape index: {}]   ;;  %s1492_s9 = inlined_call_operand.hbm [shape: f32[2,8,9], index: 9, kind: output, shape index: {}]  }
   0x1   :  { %v35_v0 = vld [vmem:[%s1484_s1] sm:$0xff]  ;;  %v34_v2 = vld [vmem:[%s1483_s0 + $0x8] sm:$0xff] }
   0x2   :  { %v33_v1 = vld [vmem:[%s1483_s0] sm:$0xff]  ;;  %1157 = vmatprep.subr.mxu0 %v35_v0 }
   0x3   :  { %1159 = vmatprep.mubr.msk.f32.mxu0 %vm36_vm0, %v33_v1  ;;  %v225_v3 = vld [vmem:[%s1491_s8] sm:$0xff]  ;;  %1158 = vmatpush3.msra.mxu0 %v35_v0 }
   0x4   :  { %v1367_v4 = vld [vmem:[%s1489_s6] sm:$0xff] }
   0x5   :  { %14 = vsyncpa [#allocation3], 0  ;;  %1160 = vmatmul.mubr.msk.f32.vlgmr.msra.gmra.mrb[0].mxu0 %vm36_vm0, %v34_v2  ;;  %1169 = vmatprep.subr.mxu0 %v225_v3  ;;  %v1375_v5 = vld [vmem:[%s1489_s6 + $0x8] sm:$0xff]  ;;  %v1380_v6 = vld [vmem:[%s1489_s6 + $0x10] sm:$0xff]  ;;  %vm330_vm1 = vcmask 1042432   ;;  %vm134_vm2 = vcmask 130048  }
   0x6   :  { %1170 = vmatpush3.msra.mxu0 %v225_v3  ;;  %1171 = vmatprep.mubr.msk.f32.mxu0 %vm36_vm0, %v1367_v4  ;;  %v1389_v7 = vld [vmem:[%s1489_s6 + $0x18] sm:$0xff]  ;;  %v132_v8 = vld [vmem:[%s1485_s2] sm:$0xff]  ;;  %v133_v9 = vld [vmem:[%s1485_s2 + $0x8] sm:$0xff]  ;;  %vm323_vm3 = vcmask 23552   ;;  %vm502_vm4 = vcmask 1040384   ;;  %vm1294_vm5 = vmmov 1  }
   0x7   :  { %v1233_v10 = vpack.c.bf16 %v133_v9, %v132_v8  ;;  %v1402_v11 = vld [vmem:[%s1487_s4] sm:$0x7]  ;;  %v217_v30 = vld [vmem:[%s1486_s3 + $0x8] sm:$0x1]  ;;  %vm1425_vm6 = vmpackc.low %vm502_vm4, %vm1294_vm5  ;;  %vm495_vm7 = vcmask 72704   ;;  %v1295_v42 = vmov 0.0|0.0  }
   0x8   :  { %v219_v28 = vld [vmem:[%s1488_s5] sm:$0x7]  ;;  %v1099_v33 = vld [vmem:[%s1491_s8 + $0x8] sm:$0xff]  ;;  %vm1296_vm8 = vmmov 0   ;;  %v1297_v43 = vmov 0.0  }
   0x9   :  { %1172 = vmatmul.mubr.msk.f32.vlgmr.msra.gmra.mrb[2].mxu0 %vm36_vm0, %v1375_v5  ;;  %1234 = vmatprep.subr.bf16.mxu1 %v1233_v10  ;;  %v216_v29 = vld [vmem:[%s1486_s3] sm:$0xff] }
   0xa   :  { %1174 = vmatprep.mubr.msk.f32.mxu0 %vm36_vm0, %v1380_v6  ;;  %1236 = vmatpush3.bf16.msra.mxu1 %v1233_v10  ;;  %v1237_v31 = vpack.c.bf16 %v217_v30, %v216_v29  ;;  %v224_v51 = vld [vmem:[%s1490_s7] sm:$0xff]  ;;  %s1298_s7 = smov [#allocation2]  }
   0xb   :  { %1177 = vmatprep.subr.msk.mxu1 %vm330_vm1, %v1402_v11  ;;  %s1068_s12 = sshll.u32 %s1298_s7, 4  ;;  %s1069_s12 = int_to_ptr.vmem [resolvable:$true] %s1068_s12 }
   0xc   :  { %1239 = vmatprep.subr.msk.bf16.mxu0 %vm1425_vm6, %v1237_v31  ;;  %s1270_s13 = scalar_lea.vmem %s1069_s12, 256  ;;  %p1275_p1 = scmp.lt.s32.totalorder %s1069_s12, %s1069_s12 }
   0xd   :  { %1175 = vmatmul.mubr.msk.f32.gmra.mrb[4].mxu0 %vm36_vm0, %v1389_v7  ;;  %p1271_p0 = scmp.ne.s32.totalorder %s1069_s12, %s1270_s13  ;;  %p1276_p2 = scmp.lt.s32.totalorder %s1270_s13, %s1270_s13 }
   0xe   :  { %1242 = vmatpush3.bf16.msk.msra.mxu0 %vm1425_vm6, %v1237_v31 }
   0xf   :  { %1201 = vmatprep.subr.mxu0 %v1099_v33  ;;  %p1277_p3 = por %p1276_p2, %p1275_p1 }
  0x11   :  { %p1278_p4 = pnand %p1277_p3, %p1271_p0 }
  0xd8   :  { %v1161_v12 = vpop.f32.mrb[0].mxu0 }
  0xd9   :  { %v1082_v13 = vmul.f32 -1.442695, %v1161_v12  ;;  %v109_v14 = vpop.f32.mrb[1].mxu0 }
  0xda   :  { %v1081_v15 = vmul.f32 -1.442695, %v109_v14 }
  0xdb   :  { %1262 = vpow2.f32 %v1082_v13 }
  0xdc   :  { %1264 = vpow2.f32 %v1081_v15  ;;  %v1173_v16 = vpop.f32.mrb[2].mxu0 }
  0xdd   :  { %v304_v17 = vpop.f32.mrb[3].mxu0 }
  0xe0   :  { %v1176_v18 = vpop.f32.mrb[4].mxu0 }
  0xe1   :  { %v314_v19 = vpop.f32.mrb[5].mxu0 }
  0xe5   :  { %v1263_v20 = vpop.eup %1262 }
  0xe6   :  { %v1265_v21 = vpop.eup %1264  ;;  %v125_v22 = vadd.f32 1.0, %v1263_v20 }
  0xe7   :  { %v124_v23 = vadd.f32 1.0, %v1265_v21 }
  0xe8   :  { %1266 = vrcp.f32 %v125_v22 }
  0xe9   :  { %1268 = vrcp.f32 %v124_v23 }
  0xf2   :  { %v1267_v24 = vpop.eup %1266 }
  0xf3   :  { %v1269_v25 = vpop.eup %1268  ;;  %v131_v27 = vmul.f32 %v1267_v24, %v1161_v12 }
  0xf4   :  { %v130_v26 = vmul.f32 %v1269_v25, %v109_v14 }
  0xf6   :  { %1166 = vmatprep.mubr.msk.f32.mxu1 %vm134_vm2, %v130_v26 }
  0xf7   :  { %1167 = vmatmul.mubr.msk.f32.vlgmr.msra.gmra.mrb[0].mxu1 %vm134_vm2, %v131_v27 }
  0xf8   :  { %1178 = vmatpush3.msk.msra.mxu1 %vm330_vm1, %v1402_v11  ;;  %1179 = vmatprep.mubr.msk.f32.mxu1 %vm323_vm3, %v304_v17 }
  0xf9   :  { %1182 = vmatprep.subr.msk.mxu1 %vm330_vm1, %v219_v28 }
  0xfb   :  { %1180 = vmatmul.mubr.msk.f32.vlgmr.msra.gmra.mrb[2].mxu1 %vm323_vm3, %v1173_v16 }
  0xfc   :  { %1183 = vmatpush3.msk.msra.mxu1 %vm330_vm1, %v219_v28  ;;  %1184 = vmatprep.mubr.msk.f32.mxu1 %vm323_vm3, %v314_v19 }
  0xfd   :  { %1243 = vmatprep.subr.bf16.mxu1 %v1295_v42 }
  0xff   :  { %1185 = vmatmul.mubr.msk.f32.vlgmr.msra.gmra.mrb[4].mxu1 %vm323_vm3, %v1176_v18 }
 0x100   :  { %1198 = vmatprep.mubr.msk.f32.mxu1 %vm1296_vm8, %v1297_v43 }
 0x1ca   :  { %v1168_v34 = vpop.f32.mrb[0].mxu1 }
 0x1cb   :  { %v207_v35 = vpop.f32.mrb[1].mxu1 }
 0x1ce   :  { %v1181_v36 = vpop.f32.mrb[2].mxu1 }
 0x1cf   :  { %v400_v37 = vpop.f32.mrb[3].mxu1 }
 0x1d2   :  { %v1186_v38 = vpop.f32.mrb[4].mxu1 }
 0x1d3   :  { %v494_v39 = vmul.f32 %v1186_v38, %v1181_v36  ;;  %v484_v40 = vpop.f32.mrb[5].mxu1 }
 0x1d4   :  { %v493_v41 = vmul.f32 %v484_v40, %v400_v37 }
 0x1d6   :  { %1191 = vmatprep.mubr.msk.f32.mxu0 %vm495_vm7, %v493_v41 }
 0x1d7   :  { %1192 = vmatmul.mubr.msk.f32.vlgmr.msra.gmra.mrb[6].mxu0 %vm495_vm7, %v494_v39 }
 0x1d8   :  { %1202 = vmatpush3.msra.mxu0 %v1099_v33  ;;  %1203 = vmatprep.mubr.msk.f32.mxu0 %vm36_vm0, %v1367_v4 }
 0x1d9   :  { %1248 = vmatprep.subr.msk.bf16.mxu0 %vm1425_vm6, %v1237_v31 }
 0x1db   :  { %1204 = vmatmul.mubr.msk.f32.vlgmr.msra.gmra.mrb[8].mxu0 %vm36_vm0, %v1375_v5 }
 0x1dc   :  { %1206 = vmatprep.mubr.msk.f32.mxu0 %vm36_vm0, %v1380_v6  ;;  %1251 = vmatpush3.bf16.msk.msra.mxu0 %vm1425_vm6, %v1237_v31 }
 0x1df   :  { %1207 = vmatmul.mubr.msk.f32.gmra.mrb[10].mxu0 %vm36_vm0, %v1389_v7 }
 0x2aa   :  { %v1193_v44 = vpop.f32.mrb[6].mxu0 }
 0x2ab   :  { %v582_v45 = vmul.f32 %v1193_v44, %v1168_v34  ;;  %v572_v46 = vpop.f32.mrb[7].mxu0 }
 0x2ac   :  { %v581_v47 = vmul.f32 %v572_v46, %v207_v35 }
 0x2ae   :  { %v1244_v48 = vpack.c.bf16 %v582_v45, %v581_v47  ;;  %v1205_v49 = vpop.f32.mrb[8].mxu0 }
 0x2af   :  { %v725_v50 = vpop.f32.mrb[9].mxu0 }
 0x2b0   :  { %1245 = vmatpush3.bf16.msra.mxu1 %v1244_v48 }
 0x2b1   :  { %1209 = vmatprep.subr.msk.mxu1 %vm330_vm1, %v1402_v11 }
 0x2b2   :  { %v1208_v52 = vpop.f32.mrb[10].mxu0 }
 0x2b3   :  { %1199 = vmatmul.mubr.msk.f32.vlgmr.msra.gmra.mrb[6].mxu1 %vm134_vm2, %v224_v51  ;;  %v735_v53 = vpop.f32.mrb[11].mxu0 }
 0x2b4   :  { %1210 = vmatpush3.msk.msra.mxu1 %vm330_vm1, %v1402_v11  ;;  %1211 = vmatprep.mubr.msk.f32.mxu1 %vm323_vm3, %v725_v50 }
 0x2b5   :  { %1214 = vmatprep.subr.msk.mxu1 %vm330_vm1, %v219_v28 }
 0x2b7   :  { %1212 = vmatmul.mubr.msk.f32.vlgmr.msra.gmra.mrb[8].mxu1 %vm323_vm3, %v1205_v49 }
 0x2b8   :  { %1215 = vmatpush3.msk.msra.mxu1 %vm330_vm1, %v219_v28  ;;  %1216 = vmatprep.mubr.msk.f32.mxu1 %vm323_vm3, %v735_v53 }
 0x2b9   :  { %1252 = vmatprep.subr.bf16.mxu1 %v1295_v42 }
 0x2bb   :  { %1217 = vmatmul.mubr.msk.f32.vlgmr.msra.gmra.mrb[10].mxu1 %vm323_vm3, %v1208_v52 }
 0x2bc   :  { %1230 = vmatprep.mubr.msk.f32.mxu1 %vm1296_vm8, %v1297_v43 }
 0x386   :  { %v652_v54 = vpop.f32.mrb[6].mxu1 }
 0x387   :  { %656 = vst.msk [vmem:[#allocation2] sm:$0xff] %vm495_vm7, %v652_v54  ;;  %v1200_v55 = vpop.f32.mrb[7].mxu1 }
 0x38a   :  { %v1213_v56 = vpop.f32.mrb[8].mxu1 }
 0x38b   :  { %v816_v57 = vpop.f32.mrb[9].mxu1 }
 0x38e   :  { %v1218_v58 = vpop.f32.mrb[10].mxu1 }
 0x38f   :  { %v907_v59 = vmul.f32 %v1218_v58, %v1213_v56  ;;  %v897_v60 = vpop.f32.mrb[11].mxu1 }
 0x390   :  { %v906_v61 = vmul.f32 %v897_v60, %v816_v57 }
 0x392   :  { %1223 = vmatprep.mubr.msk.f32.mxu0 %vm495_vm7, %v906_v61 }
 0x393   :  { %1224 = vmatmul.mubr.msk.f32.vlgmr.msra.gmra.mrb[12].mxu0 %vm495_vm7, %v907_v59 }
 0x466   :  { %v1225_v62 = vpop.f32.mrb[12].mxu0 }
 0x467   :  { %v990_v63 = vmul.f32 %v1225_v62, %v1168_v34  ;;  %v980_v0 = vpop.f32.mrb[13].mxu0 }
 0x468   :  { %v989_v1 = vmul.f32 %v980_v0, %v207_v35 }
 0x46a   :  { %v1253_v2 = vpack.c.bf16 %v990_v63, %v989_v1 }
 0x46c   :  { %1254 = vmatpush3.bf16.msra.mxu1 %v1253_v2 }
 0x46f   :  { %1231 = vmatmul.mubr.msk.f32.vlgmr.msra.gmra.mrb[12].mxu1 %vm134_vm2, %v224_v51 }
 0x542   :  { %v1057_v3 = vpop.f32.mrb[12].mxu1 }
 0x543   :  { %1062 = vst.msk [vmem:[#allocation2 + $0x8] sm:$0xff] %vm495_vm7, %v1057_v3  ;;  %v1232_v4 = vpop.f32.mrb[13].mxu1 }
 0x544   :  { %1281 = shalt.err (!%p1278_p4)
}
 0x545   :  { %s1282_s16 = scalar_lea.hbm %s1492_s9, 256 }
 0x546   :  { %p1283_p5 = scmp.ne.s32.totalorder %s1492_s9, %s1282_s16  ;;  %p1286_p6 = scmp.lt.u32.totalorder %s1282_s16, %s1492_s9 }
 0x548   :  { %p1288_p7 = pnand %p1286_p6, %p1283_p5 }
 0x54a   :  { %1291 = shalt.err (!%p1288_p7)
}
 0x54b   :  { %s1299_s19 = smov 128   ;;  %s1300_s20 = smov 8  }
 0x54c   :  { %1074 = dma.vmem_to_hbm [thread:$0]  %s1069_s12, 256, %s1492_s9, [#allocation3], %s1299_s19, %s1299_s19, %s1300_s20  }
 0x54d   :  { %1292 = dma.done.wait [#allocation3], 256  }
 0x54e   :  { %1293 = vsyncadd [#allocation3], 4294967040 }
 0x54f   :  { %1078 = vsyncpa [#allocation3], 1 }

</bundles_post_ra>
